<compile_context>
chip_gen: v5e
topology: v5e:2x2
jax: 0.10.0
libtpu: 0.0.40
codegen_flags: <defaults>
</compile_context>

<pallas_src>
import functools
import math

import jax
import jax.numpy as jnp
from jax import lax
from jax.experimental import pallas as pl
from jax.experimental.pallas import tpu as pltpu

_CHUNK = 8  # rows per wait->LayerNorm->store chunk in the HBM-gather path (one sublane group)


def _layernorm_rows(x, gamma, beta, eps):
    """Row-wise LayerNorm over the last (lane) axis.  x: (rows, D) float32."""
    mean = jnp.mean(x, axis=-1, keepdims=True)
    centered = x - mean
    var = jnp.mean(centered * centered, axis=-1, keepdims=True)  # two-pass: no cancellation
    y = centered * lax.rsqrt(var + eps)
    return y * gamma + beta


# ----------------------------------------------------------------------------------------
# Path 1: small embedding table, resident in VMEM.  Gather = dynamic row reads, no DMAs.
# ----------------------------------------------------------------------------------------
def _text_embed_vmem_kernel(ids_ref, table_ref, pe_ref, gamma_ref, beta_ref, out_ref,
                            rows_ref, *, tile_s, eps, scale):
    # ids_ref:   (B, S_pad) int32 SMEM (scalar prefetch)
    # table_ref: (V, D)     VMEM (whole table, resident: constant index_map)
    # pe_ref:    (tile_s, D) f32 VMEM ; gamma_ref/beta_ref: (1, D) f32 VMEM
    # out_ref:   (tile_s, D) VMEM (batch dim squeezed) ; rows_ref: (tile_s, D) VMEM scratch
    j = pl.program_id(0)            # sequence-tile index (outer)
    b = pl.program_id(1)            # batch index (inner; pe block stays resident across it)
    base = j * tile_s

    def gather_row(i, carry):
        tok = ids_ref[b, base + i]              # scalar id from SMEM
        rows_ref[i, :] = table_ref[tok, :]      # dynamic row read from the VMEM table
        return carry

    lax.fori_loop(0, tile_s, gather_row, 0, unroll=8)

    x = rows_ref[...].astype(jnp.float32) * scale + pe_ref[...]
    out_ref[...] = _layernorm_rows(x, gamma_ref[...], beta_ref[...], eps).astype(out_ref.dtype)


# ----------------------------------------------------------------------------------------
# Path 2: large embedding table in HBM.  Deep async-copy ring + chunked overlap of
# gather / LayerNorm / store.  Expects D % 128 == 0 for lane-dense rows and stores.
# ----------------------------------------------------------------------------------------
def _text_embed_hbm_kernel(ids_ref, table_hbm, pe_ref, gamma_ref, beta_ref, out_ref,
                           rows_ref, sems, *, tile_s, ring, chunk, eps, scale, seq_len):
    j = pl.program_id(0)
    b = pl.program_id(1)
    base = j * tile_s

    def row_copy(i):
        tok = ids_ref[b, base + i]
        return pltpu.make_async_copy(table_hbm.at[pl.ds(tok, 1)],
                                     rows_ref.at[pl.ds(i, 1)],
                                     sems.at[i % ring])

    def start_row(i):
        @pl.when(base + i < seq_len)            # skip padded tail rows entirely
        def _():
            row_copy(i).start()

    def wait_row(i):
        @pl.when(base + i < seq_len)            # same predicate + same src slice as the start
        def _():
            row_copy(i).wait()

    # Prime the gather ring (static unroll: `ring` is a Python int, ring <= tile_s).
    for i in range(ring):
        start_row(i)

    n_chunks = tile_s // chunk

    def chunk_body(c, carry):
        r0 = pl.multiple_of(c * chunk, chunk)
        # Drain this chunk's rows while keeping `ring` row copies in flight.
        for k in range(chunk):
            i = r0 + k
            wait_row(i)
            nxt = i + ring

            @pl.when(nxt < tile_s)
            def _(nxt=nxt):
                start_row(nxt)

        # Compute / store this chunk while later rows are still streaming in.
        x = (rows_ref[pl.ds(r0, chunk), :].astype(jnp.float32) * scale
             + pe_ref[pl.ds(r0, chunk), :])
        out_ref[pl.ds(r0, chunk), :] = _layernorm_rows(
            x, gamma_ref[...], beta_ref[...], eps).astype(out_ref.dtype)
        return carry

    lax.fori_loop(0, n_chunks, chunk_body, 0)


def text_embed(ids, table, pe, gamma, beta, *, eps=1e-6, tile_s=256, ring=32,
               vmem_table_bytes=(4 << 20), out_dtype=jnp.float32):
    """ids: (B, S) int token ids; table: (V, D); pe: (>=S, D). Returns (B, S, D)."""
    B, S = ids.shape
    V, D = table.shape
    scale = float(math.sqrt(D))          # plain Python float -> lowers as an immediate
    eps = float(eps)

    # Clamp ids so a gather can never read outside the table; pad uses valid id 0.
    ids_c = jnp.clip(ids.astype(jnp.int32), 0, V - 1)

    # Sequence tile: multiple of 8 sublanes; shrink for very large D (v7x has 64 MiB VMEM/TC).
    if tile_s * D * 4 > (2 << 20):
        tile_s = 128
    tile_s = max(8, (int(tile_s) // 8) * 8)
    tile_s = min(tile_s, pl.cdiv(S, 8) * 8)
    s_pad = pl.cdiv(S, tile_s) * tile_s
    ring = max(1, min(int(ring), tile_s))

    pe_s = pe[:S].astype(jnp.float32)
    if s_pad != S:
        ids_c = jnp.pad(ids_c, ((0, 0), (0, s_pad - S)))
        pe_s = jnp.pad(pe_s, ((0, s_pad - S), (0, 0)))

    gamma2 = gamma.reshape(1, D).astype(jnp.float32)
    beta2 = beta.reshape(1, D).astype(jnp.float32)

    table_bytes = V * D * jnp.dtype(table.dtype).itemsize
    use_vmem_table = table_bytes <= vmem_table_bytes

    # Grid: sequence tiles outer, batch inner -> pe block resident across the batch axis.
    # Both axes "parallel" so v7x megacore can shard whichever axis has extent >= 2.
    grid = (s_pad // tile_s, B)

    # Generation-aware scoped-VMEM budget.
    blk_bytes = tile_s * D * 4
    need = 6 * blk_bytes + (2 << 20) + (2 * table_bytes if use_vmem_table else 0)
    try:
        vmem_cap = int(pltpu.get_tpu_info().vmem_capacity_bytes)
    except Exception:
        vmem_cap = 64 << 20
    cap = max(min(vmem_cap // 2, 64 << 20), 16 << 20)
    vmem_limit = int(min(max(need, 4 << 20), cap))

    pe_spec = pl.BlockSpec((tile_s, D), lambda j, b, ids: (j, 0))
    gb_spec = pl.BlockSpec((1, D), lambda j, b, ids: (0, 0))
    out_spec = pl.BlockSpec((None, tile_s, D), lambda j, b, ids: (b, j, 0))

    if use_vmem_table:
        kernel = functools.partial(_text_embed_vmem_kernel,
                                   tile_s=tile_s, eps=eps, scale=scale)
        in_specs = [pl.BlockSpec((V, D), lambda j, b, ids: (0, 0)),  # whole table, resident
                    pe_spec, gb_spec, gb_spec]
        scratch = [pltpu.VMEM((tile_s, D), table.dtype)]
    else:
        # NOTE: this path expects D to be a multiple of 128 (lane-dense rows and stores).
        kernel = functools.partial(_text_embed_hbm_kernel,
                                   tile_s=tile_s, ring=ring, chunk=_CHUNK,
                                   eps=eps, scale=scale, seq_len=S)
        in_specs = [pl.BlockSpec(memory_space=pl.ANY),               # table stays in HBM
                    pe_spec, gb_spec, gb_spec]
        scratch = [pltpu.VMEM((tile_s, D), table.dtype),             # gathered rows
                   pltpu.SemaphoreType.DMA((ring,))]                 # deep gather DMA ring

    out = pl.pallas_call(
        kernel,
        out_shape=jax.ShapeDtypeStruct((B, s_pad, D), out_dtype),
        grid_spec=pltpu.PrefetchScalarGridSpec(
            num_scalar_prefetch=1,                   # token ids -> SMEM
            grid=grid,
            in_specs=in_specs,
            out_specs=out_spec,
            scratch_shapes=scratch,
        ),
        compiler_params=pltpu.CompilerParams(
            dimension_semantics=("parallel", "parallel"),
            vmem_limit_bytes=vmem_limit),
    )(ids_c, table, pe_s, gamma2, beta2)

    return out[:, :S] if s_pad != S else out


def make_positional_encoding(max_len, d_model):
    """Standard interleaved sin/cos PE: pe[p, 2i]=sin(p*w_i), pe[p, 2i+1]=cos(p*w_i)."""
    position = jnp.arange(max_len, dtype=jnp.float32)[:, None]
    div_term = jnp.exp(jnp.arange(0, d_model, 2, dtype=jnp.float32)
                       * (-math.log(10000.0) / d_model))
    ang = position * div_term
    pe = jnp.zeros((max_len, d_model), jnp.float32)
    pe = pe.at[:, 0::2].set(jnp.sin(ang))
    pe = pe.at[:, 1::2].set(jnp.cos(ang))
    return pe


def reference(ids, table, pe, gamma, beta, eps=1e-6):
    """Pure-JAX reference of the TextEmbed forward pass."""
    D = table.shape[1]
    x = table[ids] * math.sqrt(D)
    x = x + pe[None, :ids.shape[1]]
    mean = x.mean(-1, keepdims=True)
    var = ((x - mean) ** 2).mean(-1, keepdims=True)
    return gamma * (x - mean) / jnp.sqrt(var + eps) + beta


if __name__ == "__main__":
    key = jax.random.PRNGKey(0)
    k_ids, k_tab, k2_ids, k2_tab = jax.random.split(key, 4)

    # --- Module-sized small config: exercises the VMEM-resident-table fast path. ---
    B, S, D, V = 2, 8, 32, 64
    ids = jax.random.randint(k_ids, (B, S), 0, V, dtype=jnp.int32)
    embed_table = jax.random.normal(k_tab, (V, D), dtype=jnp.float32) * 0.02
    pe = make_positional_encoding(max_len=64, d_model=D)
    gamma = jnp.ones((D,), jnp.float32)    # nn.LayerNorm weight init (constant 1.0)
    beta = jnp.zeros((D,), jnp.float32)    # nn.LayerNorm bias init (constant 0.0)
    # Dropout in PositionalEncoding is p=0.0 -> identity; no RNG path needed.

    out = jax.block_until_ready(text_embed(ids, embed_table, pe, gamma, beta))
    ref = reference(ids, embed_table, pe, gamma, beta)
    assert out.shape == (B, S, D)
    assert jnp.allclose(out, ref, atol=1e-4, rtol=1e-4), "VMEM-path mismatch vs reference"

    # --- Config forcing the HBM row-gather path (ragged tail, D % 128 == 0). ---
    B2, S2, D2, V2 = 2, 20, 128, 512
    ids2 = jax.random.randint(k2_ids, (B2, S2), 0, V2, dtype=jnp.int32)
    table2 = jax.random.normal(k2_tab, (V2, D2), dtype=jnp.float32) * 0.02
    pe2 = make_positional_encoding(max_len=64, d_model=D2)
    gamma2 = jnp.ones((D2,), jnp.float32)
    beta2 = jnp.zeros((D2,), jnp.float32)

    out2 = jax.block_until_ready(
        text_embed(ids2, table2, pe2, gamma2, beta2, vmem_table_bytes=0))
    ref2 = reference(ids2, table2, pe2, gamma2, beta2)
    assert out2.shape == (B2, S2, D2)
    assert jnp.allclose(out2, ref2, atol=1e-4, rtol=1e-4), "HBM-path mismatch vs reference"

    print("KERNEL_OK")
</pallas_src>

<mosaic_0001>
module attributes {stable_mosaic.version = 11 : i64} {
  func.func @_text_embed_vmem_kernel(%arg0: i32, %arg1: i32, %arg2: memref<2x8xi32, #tpu.memory_space<smem>>, %arg3: memref<64x32xf32, #tpu.memory_space<vmem>>, %arg4: memref<8x32xf32, #tpu.memory_space<vmem>>, %arg5: memref<1x32xf32, #tpu.memory_space<vmem>>, %arg6: memref<1x32xf32, #tpu.memory_space<vmem>>, %arg7: memref<1x8x32xf32, #tpu.memory_space<vmem>>, %arg8: memref<8x32xf32, #tpu.memory_space<vmem>>) attributes {dimension_semantics = [#tpu.dimension_semantics<parallel>, #tpu.dimension_semantics<parallel>], iteration_bounds = array<i64: 1, 2>, scalar_prefetch = 1 : i64, scratch_operands = 1 : i64, tpu.core_type = #tpu.core_type<tc>, window_params = [{pipeline_mode = #tpu.pipeline_mode<synchronous>, transform_indices = @transform_0, window_bounds = array<i64: 64, 32>}, {transform_indices = @transform_1, window_bounds = array<i64: 8, 32>}, {pipeline_mode = #tpu.pipeline_mode<synchronous>, transform_indices = @transform_2, window_bounds = array<i64: 1, 32>}, {pipeline_mode = #tpu.pipeline_mode<synchronous>, transform_indices = @transform_3, window_bounds = array<i64: 1, 32>}, {transform_indices = @transform_4, window_bounds = array<i64: 1, 8, 32>}]} {
    %c8_i32 = arith.constant 8 : i32
    %0 = arith.muli %arg0, %c8_i32 : i32
    %c0_i32 = arith.constant 0 : i32
    %1 = arith.addi %0, %c0_i32 : i32
    %2 = arith.index_cast %arg1 : i32 to index
    %3 = arith.index_cast %1 : i32 to index
    %4 = memref.load %arg2[%2, %3] : memref<2x8xi32, #tpu.memory_space<smem>>
    %5 = arith.index_cast %4 : i32 to index
    %c0 = arith.constant 0 : index
    %6 = vector.load %arg3[%5, %c0] : memref<64x32xf32, #tpu.memory_space<vmem>>, vector<1x32xf32>
    %7 = vector.shape_cast %6 : vector<1x32xf32> to vector<32xf32>
    %8 = arith.index_cast %c0_i32 : i32 to index
    %c0_0 = arith.constant 0 : index
    %9 = vector.load %arg8[%8, %c0_0] : memref<8x32xf32, #tpu.memory_space<vmem>>, vector<1x32xf32>
    %10 = vector.shape_cast %9 : vector<1x32xf32> to vector<32xf32>
    %11 = vector.shape_cast %7 : vector<32xf32> to vector<1x32xf32>
    tpu.vector_store %arg8[%8, %c0_0], %11 {strides = array<i32>} : memref<8x32xf32, #tpu.memory_space<vmem>>, vector<1x32xf32>,
    %c1_i32 = arith.constant 1 : i32
    %12 = arith.addi %0, %c1_i32 : i32
    %13 = arith.index_cast %arg1 : i32 to index
    %14 = arith.index_cast %12 : i32 to index
    %15 = memref.load %arg2[%13, %14] : memref<2x8xi32, #tpu.memory_space<smem>>
    %16 = arith.index_cast %15 : i32 to index
    %c0_1 = arith.constant 0 : index
    %17 = vector.load %arg3[%16, %c0_1] : memref<64x32xf32, #tpu.memory_space<vmem>>, vector<1x32xf32>
    %18 = vector.shape_cast %17 : vector<1x32xf32> to vector<32xf32>
    %19 = arith.index_cast %c1_i32 : i32 to index
    %c0_2 = arith.constant 0 : index
    %20 = vector.load %arg8[%19, %c0_2] : memref<8x32xf32, #tpu.memory_space<vmem>>, vector<1x32xf32>
    %21 = vector.shape_cast %20 : vector<1x32xf32> to vector<32xf32>
    %22 = vector.shape_cast %18 : vector<32xf32> to vector<1x32xf32>
    tpu.vector_store %arg8[%19, %c0_2], %22 {strides = array<i32>} : memref<8x32xf32, #tpu.memory_space<vmem>>, vector<1x32xf32>,
    %c2_i32 = arith.constant 2 : i32
    %23 = arith.addi %0, %c2_i32 : i32
    %24 = arith.index_cast %arg1 : i32 to index
    %25 = arith.index_cast %23 : i32 to index
    %26 = memref.load %arg2[%24, %25] : memref<2x8xi32, #tpu.memory_space<smem>>
    %27 = arith.index_cast %26 : i32 to index
    %c0_3 = arith.constant 0 : index
    %28 = vector.load %arg3[%27, %c0_3] : memref<64x32xf32, #tpu.memory_space<vmem>>, vector<1x32xf32>
    %29 = vector.shape_cast %28 : vector<1x32xf32> to vector<32xf32>
    %30 = arith.index_cast %c2_i32 : i32 to index
    %c0_4 = arith.constant 0 : index
    %31 = vector.load %arg8[%30, %c0_4] : memref<8x32xf32, #tpu.memory_space<vmem>>, vector<1x32xf32>
    %32 = vector.shape_cast %31 : vector<1x32xf32> to vector<32xf32>
    %33 = vector.shape_cast %29 : vector<32xf32> to vector<1x32xf32>
    tpu.vector_store %arg8[%30, %c0_4], %33 {strides = array<i32>} : memref<8x32xf32, #tpu.memory_space<vmem>>, vector<1x32xf32>,
    %c3_i32 = arith.constant 3 : i32
    %34 = arith.addi %0, %c3_i32 : i32
    %35 = arith.index_cast %arg1 : i32 to index
    %36 = arith.index_cast %34 : i32 to index
    %37 = memref.load %arg2[%35, %36] : memref<2x8xi32, #tpu.memory_space<smem>>
    %38 = arith.index_cast %37 : i32 to index
    %c0_5 = arith.constant 0 : index
    %39 = vector.load %arg3[%38, %c0_5] : memref<64x32xf32, #tpu.memory_space<vmem>>, vector<1x32xf32>
    %40 = vector.shape_cast %39 : vector<1x32xf32> to vector<32xf32>
    %41 = arith.index_cast %c3_i32 : i32 to index
    %c0_6 = arith.constant 0 : index
    %42 = vector.load %arg8[%41, %c0_6] : memref<8x32xf32, #tpu.memory_space<vmem>>, vector<1x32xf32>
    %43 = vector.shape_cast %42 : vector<1x32xf32> to vector<32xf32>
    %44 = vector.shape_cast %40 : vector<32xf32> to vector<1x32xf32>
    tpu.vector_store %arg8[%41, %c0_6], %44 {strides = array<i32>} : memref<8x32xf32, #tpu.memory_space<vmem>>, vector<1x32xf32>,
    %c4_i32 = arith.constant 4 : i32
    %45 = arith.addi %0, %c4_i32 : i32
    %46 = arith.index_cast %arg1 : i32 to index
    %47 = arith.index_cast %45 : i32 to index
    %48 = memref.load %arg2[%46, %47] : memref<2x8xi32, #tpu.memory_space<smem>>
    %49 = arith.index_cast %48 : i32 to index
    %c0_7 = arith.constant 0 : index
    %50 = vector.load %arg3[%49, %c0_7] : memref<64x32xf32, #tpu.memory_space<vmem>>, vector<1x32xf32>
    %51 = vector.shape_cast %50 : vector<1x32xf32> to vector<32xf32>
    %52 = arith.index_cast %c4_i32 : i32 to index
    %c0_8 = arith.constant 0 : index
    %53 = vector.load %arg8[%52, %c0_8] : memref<8x32xf32, #tpu.memory_space<vmem>>, vector<1x32xf32>
    %54 = vector.shape_cast %53 : vector<1x32xf32> to vector<32xf32>
    %55 = vector.shape_cast %51 : vector<32xf32> to vector<1x32xf32>
    tpu.vector_store %arg8[%52, %c0_8], %55 {strides = array<i32>} : memref<8x32xf32, #tpu.memory_space<vmem>>, vector<1x32xf32>,
    %c5_i32 = arith.constant 5 : i32
    %56 = arith.addi %0, %c5_i32 : i32
    %57 = arith.index_cast %arg1 : i32 to index
    %58 = arith.index_cast %56 : i32 to index
    %59 = memref.load %arg2[%57, %58] : memref<2x8xi32, #tpu.memory_space<smem>>
    %60 = arith.index_cast %59 : i32 to index
    %c0_9 = arith.constant 0 : index
    %61 = vector.load %arg3[%60, %c0_9] : memref<64x32xf32, #tpu.memory_space<vmem>>, vector<1x32xf32>
    %62 = vector.shape_cast %61 : vector<1x32xf32> to vector<32xf32>
    %63 = arith.index_cast %c5_i32 : i32 to index
    %c0_10 = arith.constant 0 : index
    %64 = vector.load %arg8[%63, %c0_10] : memref<8x32xf32, #tpu.memory_space<vmem>>, vector<1x32xf32>
    %65 = vector.shape_cast %64 : vector<1x32xf32> to vector<32xf32>
    %66 = vector.shape_cast %62 : vector<32xf32> to vector<1x32xf32>
    tpu.vector_store %arg8[%63, %c0_10], %66 {strides = array<i32>} : memref<8x32xf32, #tpu.memory_space<vmem>>, vector<1x32xf32>,
    %c6_i32 = arith.constant 6 : i32
    %67 = arith.addi %0, %c6_i32 : i32
    %68 = arith.index_cast %arg1 : i32 to index
    %69 = arith.index_cast %67 : i32 to index
    %70 = memref.load %arg2[%68, %69] : memref<2x8xi32, #tpu.memory_space<smem>>
    %71 = arith.index_cast %70 : i32 to index
    %c0_11 = arith.constant 0 : index
    %72 = vector.load %arg3[%71, %c0_11] : memref<64x32xf32, #tpu.memory_space<vmem>>, vector<1x32xf32>
    %73 = vector.shape_cast %72 : vector<1x32xf32> to vector<32xf32>
    %74 = arith.index_cast %c6_i32 : i32 to index
    %c0_12 = arith.constant 0 : index
    %75 = vector.load %arg8[%74, %c0_12] : memref<8x32xf32, #tpu.memory_space<vmem>>, vector<1x32xf32>
    %76 = vector.shape_cast %75 : vector<1x32xf32> to vector<32xf32>
    %77 = vector.shape_cast %73 : vector<32xf32> to vector<1x32xf32>
    tpu.vector_store %arg8[%74, %c0_12], %77 {strides = array<i32>} : memref<8x32xf32, #tpu.memory_space<vmem>>, vector<1x32xf32>,
    %c7_i32 = arith.constant 7 : i32
    %78 = arith.addi %0, %c7_i32 : i32
    %79 = arith.index_cast %arg1 : i32 to index
    %80 = arith.index_cast %78 : i32 to index
    %81 = memref.load %arg2[%79, %80] : memref<2x8xi32, #tpu.memory_space<smem>>
    %82 = arith.index_cast %81 : i32 to index
    %c0_13 = arith.constant 0 : index
    %83 = vector.load %arg3[%82, %c0_13] : memref<64x32xf32, #tpu.memory_space<vmem>>, vector<1x32xf32>
    %84 = vector.shape_cast %83 : vector<1x32xf32> to vector<32xf32>
    %85 = arith.index_cast %c7_i32 : i32 to index
    %c0_14 = arith.constant 0 : index
    %86 = vector.load %arg8[%85, %c0_14] : memref<8x32xf32, #tpu.memory_space<vmem>>, vector<1x32xf32>
    %87 = vector.shape_cast %86 : vector<1x32xf32> to vector<32xf32>
    %88 = vector.shape_cast %84 : vector<32xf32> to vector<1x32xf32>
    tpu.vector_store %arg8[%85, %c0_14], %88 {strides = array<i32>} : memref<8x32xf32, #tpu.memory_space<vmem>>, vector<1x32xf32>,
    %c8_i32_15 = arith.constant 8 : i32
    %c0_16 = arith.constant 0 : index
    %c0_17 = arith.constant 0 : index
    %89 = vector.load %arg8[%c0_16, %c0_17] : memref<8x32xf32, #tpu.memory_space<vmem>>, vector<8x32xf32>
    %cst = arith.constant 5.65685415 : f32
    %90 = vector.broadcast %cst : f32 to vector<8x32xf32>
    %91 = arith.mulf %89, %90 : vector<8x32xf32>
    %c0_18 = arith.constant 0 : index
    %c0_19 = arith.constant 0 : index
    %92 = vector.load %arg4[%c0_18, %c0_19] : memref<8x32xf32, #tpu.memory_space<vmem>>, vector<8x32xf32>
    %93 = arith.addf %91, %92 : vector<8x32xf32>
    %c0_20 = arith.constant 0 : index
    %c0_21 = arith.constant 0 : index
    %94 = vector.load %arg5[%c0_20, %c0_21] : memref<1x32xf32, #tpu.memory_space<vmem>>, vector<1x32xf32>
    %c0_22 = arith.constant 0 : index
    %c0_23 = arith.constant 0 : index
    %95 = vector.load %arg6[%c0_22, %c0_23] : memref<1x32xf32, #tpu.memory_space<vmem>>, vector<1x32xf32>
    %cst_24 = arith.constant dense<0.000000e+00> : vector<8xf32>
    %96 = vector.multi_reduction <add>, %93, %cst_24 [1] : vector<8x32xf32> to vector<8xf32>
    %97 = vector.shape_cast %96 : vector<8xf32> to vector<8x1xf32>
    %cst_25 = arith.constant 3.200000e+01 : f32
    %98 = vector.broadcast %cst_25 : f32 to vector<8x1xf32>
    %99 = arith.divf %97, %98 : vector<8x1xf32>
    %100 = vector.broadcast %99 : vector<8x1xf32> to vector<8x32xf32>
    %101 = arith.subf %93, %100 : vector<8x32xf32>
    %102 = arith.mulf %101, %101 : vector<8x32xf32>
    %cst_26 = arith.constant dense<0.000000e+00> : vector<8xf32>
    %103 = vector.multi_reduction <add>, %102, %cst_26 [1] : vector<8x32xf32> to vector<8xf32>
    %104 = vector.shape_cast %103 : vector<8xf32> to vector<8x1xf32>
    %cst_27 = arith.constant 3.200000e+01 : f32
    %105 = vector.broadcast %cst_27 : f32 to vector<8x1xf32>
    %106 = arith.divf %104, %105 : vector<8x1xf32>
    %cst_28 = arith.constant 9.99999997E-7 : f32
    %107 = vector.broadcast %cst_28 : f32 to vector<8x1xf32>
    %108 = arith.addf %106, %107 : vector<8x1xf32>
    %109 = math.rsqrt %108 : vector<8x1xf32>
    %110 = vector.broadcast %109 : vector<8x1xf32> to vector<8x32xf32>
    %111 = arith.mulf %101, %110 : vector<8x32xf32>
    %112 = vector.broadcast %94 : vector<1x32xf32> to vector<8x32xf32>
    %113 = arith.mulf %111, %112 : vector<8x32xf32>
    %114 = vector.broadcast %95 : vector<1x32xf32> to vector<8x32xf32>
    %115 = arith.addf %113, %114 : vector<8x32xf32>
    %c0_29 = arith.constant 0 : index
    %c0_30 = arith.constant 0 : index
    %c0_31 = arith.constant 0 : index
    %116 = vector.load %arg7[%c0_29, %c0_30, %c0_31] : memref<1x8x32xf32, #tpu.memory_space<vmem>>, vector<1x8x32xf32>
    %117 = vector.shape_cast %116 : vector<1x8x32xf32> to vector<8x32xf32>
    %118 = vector.shape_cast %115 : vector<8x32xf32> to vector<1x8x32xf32>
    tpu.vector_store %arg7[%c0_29, %c0_30, %c0_31], %118 {strides = array<i32>} : memref<1x8x32xf32, #tpu.memory_space<vmem>>, vector<1x8x32xf32>,
    return
  }
  func.func @transform_0(%arg0: i32, %arg1: i32, %arg2: memref<2x8xi32, #tpu.memory_space<smem>>) -> (i32, i32) {
    %c0_i32 = arith.constant 0 : i32
    %c0_i32_0 = arith.constant 0 : i32
    %c0_i32_1 = arith.constant 0 : i32
    return %c0_i32, %c0_i32_0 : i32, i32
  }
  func.func @transform_1(%arg0: i32, %arg1: i32, %arg2: memref<2x8xi32, #tpu.memory_space<smem>>) -> (i32, i32) {
    %c0_i32 = arith.constant 0 : i32
    %c0_i32_0 = arith.constant 0 : i32
    return %arg0, %c0_i32 : i32, i32
  }
  func.func @transform_2(%arg0: i32, %arg1: i32, %arg2: memref<2x8xi32, #tpu.memory_space<smem>>) -> (i32, i32) {
    %c0_i32 = arith.constant 0 : i32
    %c0_i32_0 = arith.constant 0 : i32
    %c0_i32_1 = arith.constant 0 : i32
    return %c0_i32, %c0_i32_0 : i32, i32
  }
  func.func @transform_3(%arg0: i32, %arg1: i32, %arg2: memref<2x8xi32, #tpu.memory_space<smem>>) -> (i32, i32) {
    %c0_i32 = arith.constant 0 : i32
    %c0_i32_0 = arith.constant 0 : i32
    %c0_i32_1 = arith.constant 0 : i32
    return %c0_i32, %c0_i32_0 : i32, i32
  }
  func.func @transform_4(%arg0: i32, %arg1: i32, %arg2: memref<2x8xi32, #tpu.memory_space<smem>>) -> (i32, i32, i32) {
    %c0_i32 = arith.constant 0 : i32
    %c0_i32_0 = arith.constant 0 : i32
    return %arg1, %arg0, %c0_i32 : i32, i32, i32
  }
}

</mosaic_0001>

<bundles_post_ra>
// kernel: tpu_custom_call.1
= control target key start
LH: loop header
LB: loop body
LE: loop exit
PB: predicated region body
PF: predicated region fallthrough
CT: control target
= control target key end

     0   :  { %s629_s21 = smov [#allocation4]   ;;  %s801_s0 = inlined_call_operand.vmem [shape: s32[2,8], index: 0, kind: input, shape index: {}]   ;;  %s802_s1 = inlined_call_operand.vmem [shape: f32[64,32], index: 1, kind: input, shape index: {}]   ;;  %s803_s2 = inlined_call_operand.vmem [shape: f32[8,32], index: 2, kind: input, shape index: {}]   ;;  %s804_s3 = inlined_call_operand.vmem [shape: f32[1,32], index: 3, kind: input, shape index: {}]   ;;  %s805_s4 = inlined_call_operand.vmem [shape: f32[1,32], index: 4, kind: input, shape index: {}]   ;;  %s806_s5 = inlined_call_operand.hbm [shape: f32[2,8,32], index: 5, kind: output, shape index: {}]  }
   0x1   :  { %s11_s20 = sshll.u32 %s801_s0, 4  ;;  %s12_s20 = int_to_ptr.vmem [resolvable:$true] %s11_s20 }
   0x2   :  { %14 = dma.vmem_to_smem %s12_s20, 32, %s629_s21, [#allocation3] }
   0x3   :  { %599 = dma.done.wait [#allocation3], 32 }
   0x4   :  { %600 = vsyncadd [#allocation3], 4294967264 }
   0x5   :  { %17 = sfence }
   0x6   :  { %18 = vsyncpa [#allocation6], 0 }
   0x7   :  { %20 = vsyncpa [#allocation6 + $0x1], 0  ;;  %s664_s22 = smov 0   ;;  %s666_s23 = smov 0  }
   0x8   :  { %s668_s24 = smov 0   ;;  %s670_s25 = smov 0  }
   0x9   :  { %s672_s26 = smov 0   ;;  %s674_s27 = smov 0  }
   0xa LB: > { %810 = sst [smem:[#allocation9_spill]] %s615_s24  ;;  %s454_s0 = sadd.s32 4294967295, %s627_s27   ;;  %s627_s27 = sphi %s674_s27, %s26_s27   ;;  %s623_s26 = sphi %s672_s26, %s819_s26   ;;  %s619_s25 = sphi %s670_s25, %s818_s25   ;;  %s615_s24 = sphi %s668_s24, %s817_s24   ;;  %s611_s23 = sphi %s666_s23, %s821_s23   ;;  %s607_s22 = sphi %s664_s22, %s820_s22  }
   0xb   : > { %811 = sst [smem:[#allocation10_spill]] %s623_s26  ;;  %s455_s28 = sadd.s32 4294967294, %s627_s27  }
   0xc   : > { %s35_s29 = sadd.s32 1, %s623_s26  ;;  %s136_s30 = sadd.s32 1, %s615_s24 }
   0xd   : > { %p36_p0 = scmp.ge.s32.totalorder %s35_s29, 2  ;;  %p146_p1 = scmp.ne.s32.totalorder %s615_s24, %s611_s23 }
   0xe   : > { %p147_p2 = scmp.eq.s32.totalorder %s454_s0, 1  ;;  %p152_p3 = scmp.ne.s32.totalorder %s611_s23, %s607_s22 }
   0xf   : > { %s823_s29 = smov (%p36_p0, %s35_s29), 0  ;;  %p153_p5 = scmp.eq.s32.totalorder %s455_s28, 1 }
  0x10   : > { %812 = sst [smem:[#allocation11_spill]] %s823_s29  ;;  %p704_p4 = por %p147_p2, %p146_p1 }
  0x11   : > { %s131_s7 = ssub.s32 %s623_s26, %s823_s29  ;;  %p458_p6 = scmp.ge.s32.totalorder %s627_s27, 1 }
  0x12   : > { %p134_p7 = scmp.eq.s32.totalorder %s131_s7, 0  ;;  %p711_p8 = por %p153_p5, %p152_p3 }
  0x13   : > { %p187_p9 = scmp.lt.s32.totalorder %s627_s27, 3 }
  0x14   : > { %s717_s9 = scalar_select %p134_p7, %s615_s24, %s136_s30  }
  0x15   : > { %p188_p10 = pnand %p458_p6, %p187_p9 }
  0x16   : > { %815 = sst [smem:[#allocation12_spill]] %s717_s9  ;;  %s460_s10 = sshll.u32 (!%p188_p10), %s619_s25, 7 }
  0x17   : > { %191 = sbr.rel (%p188_p10) target bundleno = 322 (0x142), region = 36  ;;  %s224_s11 = sld [smem:[#allocation4 + %s460_s10]] (!%p188_p10) }
  0x18   : > { %s236_s12 = sadd.s32 (!%p188_p10), 1, %s460_s10  ;;  %s248_s14 = sadd.s32 (!%p188_p10), 2, %s460_s10 }
  0x19   : > { %s237_s13 = sld [smem:[#allocation4 + %s236_s12]] (!%p188_p10)  ;;  %s260_s16 = sadd.s32 (!%p188_p10), 3, %s460_s10 }
  0x1a   : > { %s249_s15 = sld [smem:[#allocation4 + %s248_s14]] (!%p188_p10)  ;;  %s272_s18 = sadd.s32 (!%p188_p10), 4, %s460_s10 }
  0x1b   : > { %s261_s17 = sld [smem:[#allocation4 + %s260_s16]] (!%p188_p10)  ;;  %s284_s20 = sadd.s32 (!%p188_p10), 5, %s460_s10 }
  0x1c   : > { %s273_s19 = sld [smem:[#allocation4 + %s272_s18]]  ;;  %vm227_vm0 = vcmask 253952   ;;  %s296_s0 = sadd.s32 6, %s460_s10  ;;  %v315_v9 = vld [vmem:[%s803_s2] sm:$0xff]  ;;  %vm319_vm1 = vcmask 261120   ;;  %v630_v13 = vmov 32.0  }
  0x1d   : > { %s285_s21 = sld [smem:[#allocation4 + %s284_s20]]  ;;  %s225_s7 = scalar_lea.vmem %s802_s1, %s224_s11  ;;  %531 = vrcp.f32 %v630_v13  ;;  %v529_v34 = vld [vmem:[%s804_s3] ss:$0 sm:$0xff] }
  0x1e   : > { %s297_s29 = sld [smem:[#allocation4 + %s296_s0]]  ;;  %v226_v0 = vld [vmem:[%s225_s7] sm:$0x1]  ;;  %s308_s24 = sadd.s32 7, %s460_s10 }
  0x1f   : > { %s238_s12 = scalar_lea.vmem %s802_s1, %s237_s13  ;;  %228 = vst.msk [vmem:[#allocation2] sm:$0x1] %vm227_vm0, %v226_v0  ;;  %s309_s20 = sld [smem:[#allocation4 + %s308_s24]]  ;;  %v530_v37 = vld [vmem:[%s805_s4] ss:$0 sm:$0xff] }
  0x20   : > { %v239_v1 = vld [vmem:[%s238_s12] sm:$0x1]  ;;  %s250_s18 = scalar_lea.vmem %s802_s1, %s249_s15 }
  0x21   : > { %240 = vst.msk [vmem:[#allocation2 + $0x1] sm:$0x1] %vm227_vm0, %v239_v1  ;;  %v251_v2 = vld [vmem:[%s250_s18] sm:$0x1]  ;;  %s262_s0 = scalar_lea.vmem %s802_s1, %s261_s17 }
  0x22   : > { %252 = vst.msk [vmem:[#allocation2 + $0x2] sm:$0x1] %vm227_vm0, %v251_v2  ;;  %v263_v3 = vld [vmem:[%s262_s0] sm:$0x1]  ;;  %s274_s10 = scalar_lea.vmem %s802_s1, %s273_s19 }
  0x23   : > { %264 = vst.msk [vmem:[#allocation2 + $0x3] sm:$0x1] %vm227_vm0, %v263_v3  ;;  %v275_v4 = vld [vmem:[%s274_s10] sm:$0x1]  ;;  %s286_s24 = scalar_lea.vmem %s802_s1, %s285_s21  ;;  %v532_v14 = vpop.eup %531 }
  0x24   : > { %276 = vst.msk [vmem:[#allocation2 + $0x4] sm:$0x1] %vm227_vm0, %v275_v4  ;;  %v287_v5 = vld [vmem:[%s286_s24] sm:$0x1]  ;;  %s298_s17 = scalar_lea.vmem %s802_s1, %s297_s29  ;;  %v324_v15 = vmul.f32 32.0, %v532_v14  ;;  %vm328_vm2 = vweird.f32 %v532_v14  ;;  %s209_s29 = sand.u32 1, %s611_s23  }
  0x25   : > { %288 = vst.msk [vmem:[#allocation2 + $0x5] sm:$0x1] %vm227_vm0, %v287_v5  ;;  %v299_v6 = vld [vmem:[%s298_s17] sm:$0x1]  ;;  %s310_s14 = scalar_lea.vmem %s802_s1, %s309_s20  ;;  %s459_s18 = sshll.u32 %s209_s29, 3 }
  0x26   : > { %300 = vst.msk [vmem:[#allocation2 + $0x6] sm:$0x1] %vm227_vm0, %v299_v6  ;;  %v311_v7 = vld [vmem:[%s310_s14] sm:$0x1]  ;;  %v325_v16 = vsub.f32 1.0, %v324_v15  ;;  %s469_s20 = sshll.u32 %s619_s25, 3 }
  0x27   : > { %312 = vst.msk [vmem:[#allocation2 + $0x7] sm:$0x1] %vm227_vm0, %v311_v7  ;;  %s370_s9 = scalar_lea.hbm %s806_s5, %s469_s20  ;;  %s211_s15 = scalar_lea.vmem [#allocation5], %s459_s18 }
  0x28   : > { %v326_v17 = vmul.f32 %v532_v14, %v325_v16  ;;  %s372_s25 = sshll.u32 %s211_s15, 4  ;;  %s374_s24 = sshll.u32 %s370_s9, 4  ;;  %s373_s25 = int_to_ptr.vmem [resolvable:$true] %s372_s25  ;;  %s375_s24 = int_to_ptr.hbm [resolvable:$true] %s374_s24 }
  0x29   : > { %s359_s30 = scalar_lea.sflag [#allocation6], %s209_s29  ;;  %s561_s7 = sshra.s32 %s375_s24, 4  ;;  %s562_s7 = int_to_ptr.hbm [resolvable:$true] %s561_s7 }
  0x2a   : > { %v327_v18 = vadd.f32 %v532_v14, %v326_v17  ;;  %s563_s17 = scalar_lea.hbm %s562_s7, 8  ;;  %s567_s14 = scalar_lea.hbm %s806_s5, 16 }
  0x2b   : > { %p564_p11 = scmp.ne.s32.totalorder %s562_s7, %s563_s17  ;;  %p568_p0 = scmp.lt.s32.totalorder %s562_s7, %s806_s5 }
  0x2c   : > { %v329_v19 = vsel %vm328_vm2, %v532_v14, %v327_v18  ;;  %p569_p1 = scmp.lt.s32.totalorder %s567_s14, %s563_s17 }
  0x2d   : > { %p565_p12 = pnand %p564_p11, %p704_p4 }
  0x2e   : > { %v313_v8 = vld [vmem:[#allocation2] sm:$0xff]  ;;  %p570_p2 = por %p569_p1, %p568_p0 }
  0x2f   : > { %v314_v10 = vmul.f32 5.656854, %v313_v8  ;;  %p566_p13 = pneg %p565_p12 }
  0x31   : > { %v316_v11 = vadd.f32 %v315_v9, %v314_v10  ;;  %p571_p3 = pnand %p570_p2, %p566_p13 }
  0x33   : > { %v320_v12 = vsel %vm319_vm1, %v316_v11, 0.0 }
  0x34   : > { %321 = vadd.xlane.f32.xlu0 %v320_v12 }
  0xa7   : > { %v322_v20 = vpop.xlane.xlu0 %321 }
  0xa8   : > { %v330_v21 = vmul.f32 %v329_v19, %v322_v20 }
  0xaa   : > { %v331_v22 = vsub.f32 %v316_v11, %v330_v21 }
  0xac   : > { %v332_v23 = vmul.f32 %v331_v22, %v331_v22 }
  0xae   : > { %v333_v24 = vsel %vm319_vm1, %v332_v23, 0.0 }
  0xaf   : > { %334 = vadd.xlane.f32.xlu0 %v333_v24 }
 0x122   : > { %v335_v25 = vpop.xlane.xlu0 %334 }
 0x123   : > { %v336_v26 = vmul.f32 %v335_v25, %v329_v19 }
 0x125   : > { %v337_v27 = vadd.f32 1e-06, %v336_v26 }
 0x127   : > { %533 = vrsqrt.f32 %v337_v27  ;;  %vm344_vm4 = vweird.f32 %v337_v27 }
 0x12d   : > { %v534_v28 = vpop.eup %533 }
 0x12e   : > { %v339_v29 = vmul.f32 %v534_v28, %v337_v27  ;;  %vm345_vm3 = vweird.f32 %v534_v28 }
 0x12f   : > { %vm346_vm5 = vmor %vm344_vm4, %vm345_vm3 }
 0x130   : > { %v340_v30 = vmul.f32 %v534_v28, %v339_v29 }
 0x132   : > { %v341_v31 = vmul.f32 0.5, %v340_v30 }
 0x134   : > { %v342_v32 = vsub.f32 1.5, %v341_v31 }
 0x136   : > { %v343_v33 = vmul.f32 %v534_v28, %v342_v32 }
 0x138   : > { %v347_v35 = vsel %vm346_vm5, %v534_v28, %v343_v33 }
 0x139   : > { %v348_v36 = vmul.f32 %v347_v35, %v331_v22 }
 0x13b   : > { %v352_v38 = vmul.f32 %v529_v34, %v348_v36 }
 0x13d   : > { %v356_v39 = vadd.f32 %v530_v37, %v352_v38 }
 0x13f   : > { %357 = vst.msk [vmem:[%s211_s15] sm:$0xff] %vm319_vm1, %v356_v39 }
 0x140   : > { %574 = shalt.err (!%p571_p3)
}
 0x141   : > { %472 = dma.vmem_to_hbm [thread:$0]  (%p704_p4), %s373_s25, 128, %s375_s24, %s359_s30  }
 0x142 PF: > { %p478_p5 = scmp.ge.s32.totalorder %s627_s27, 2  ;;  %s386_s29 = sand.u32 1, %s607_s22  }
 0x143   : > { %s387_s18 = scalar_lea.sflag [#allocation6], %s386_s29 }
 0x144   : > { %p475_p6 = pnand %p478_p5, %p711_p8 }
 0x146   : > { %p476_p7 = pneg %p475_p6 }
 0x148   : > { %602 = dma.done.wait (%p476_p7), %s387_s18, 128  }
 0x149   : > { %604 = vsyncadd (%p476_p7), %s387_s18, 4294967168  ;;  %s26_s27 = sadd.s32 1, %s627_s27   ;;  %s816_s20 = sld [smem:[#allocation9_spill]] }
 0x14a   : > { %p23_p9 = scmp.ge.s32.totalorder %s26_s27, 4   ;;  %s817_s24 = sld [smem:[#allocation12_spill]] }
 0x14b   : > { %s818_s25 = sld [smem:[#allocation10_spill]]  ;;  %s820_s22 = smov %s611_s23 }
 0x14c   : > { %s819_s26 = sld [smem:[#allocation11_spill]]  ;;  %25 = sbr.rel (!%p23_p9) target bundleno = 10 (0xa), region = 79 }
 0x14f   : > { %s821_s23 = smov %s816_s20 }
 0x151   :  { %393 = vsyncpa [#allocation6], 1 }
 0x152   :  { %395 = vsyncpa [#allocation6 + $0x1], 1 }

</bundles_post_ra>
